<compile_context>
chip_gen: v5e
topology: v5e:2x2
jax: 0.10.0
libtpu: 0.0.40
codegen_flags: <defaults>
</compile_context>

<pallas_src>
import functools

import jax
import jax.numpy as jnp
from jax.experimental import pallas as pl
from jax.experimental.pallas import tpu as pltpu


def _alignment_kernel(params_ref, rgb_ref, th_ref,
                      arg_ref, ath_ref, psum_ref, *, NB, S, P):
    """One grid step handles an (NB, 2, S, 128) tile of each feature map.

    params_ref: (6,)            SMEM  [w00, w01, w10, w11, b0, b1]  (conv1x1: 2 -> 2)
    rgb_ref:    (NB, 2, S, 128) VMEM rgb tile
    th_ref:     (NB, 2, S, 128) VMEM thermal tile
    arg_ref:    (NB, 2, S, 128) aligned rgb (out)
    ath_ref:    (NB, 2, S, 128) aligned thermal (out)
    psum_ref:   (1, 1, P, 128)  per-tile partial sum of (rgb - thermal)^2 (out)
    """
    # conv1x1 weights / bias as SMEM scalars (VPU FMAs, no MXU).
    w00 = params_ref[0]
    w01 = params_ref[1]
    w10 = params_ref[2]
    w11 = params_ref[3]
    b0 = params_ref[4]
    b1 = params_ref[5]

    rgb = rgb_ref[...]                          # (NB, 2, S, 128)
    th = th_ref[...]

    rgb0 = rgb[:, 0]                            # (NB, S, 128)
    rgb1 = rgb[:, 1]
    th0 = th[:, 0]
    th1 = th[:, 1]

    # offsets = Conv1x1(rgb)  (per-pixel 2x2 matvec on the VPU)
    off0 = w00 * rgb0 + w01 * rgb1 + b0
    off1 = w10 * rgb0 + w11 * rgb1 + b1

    # apply_offsets: rgb + offsets ; thermal - offsets
    arg_ref[:, 0, :, :] = (rgb0 + off0).astype(arg_ref.dtype)
    arg_ref[:, 1, :, :] = (rgb1 + off1).astype(arg_ref.dtype)
    ath_ref[:, 0, :, :] = (th0 - off0).astype(ath_ref.dtype)
    ath_ref[:, 1, :, :] = (th1 - off1).astype(ath_ref.dtype)

    # alignment-loss contribution: sum((rgb - thermal)^2) over this tile, kept as a
    # lane/sublane-dense (P, 128) partial (pure VPU adds; final reduce in the wrapper).
    d0 = (rgb0 - th0).astype(jnp.float32)
    d1 = (rgb1 - th1).astype(jnp.float32)
    dsq = d0 * d0 + d1 * d1                     # (NB, S, 128) f32

    acc = dsq[0]                                # (S, 128)
    for b in range(1, NB):                      # fold batch planes (plain vector adds)
        acc = acc + dsq[b]
    partial = acc[0:P, :]
    for g in range(1, S // P):                  # fold sublane groups (aligned slices)
        partial = partial + acc[g * P:(g + 1) * P, :]
    psum_ref[0, 0, :, :] = partial


def _pick_tile_rows(R, s_max=512):
    """Rows of 128 lanes per tile: multiple of 8 dividing R, or the full extent."""
    if R <= s_max:
        return R                                # full extent is always a legal block dim
    for s in range((s_max // 8) * 8, 7, -8):    # largest multiple-of-8 divisor <= s_max
        if R % s == 0:
            return s
    return R                                    # fallback (rare shapes): whole extent


def _pick_batch_block(N, S, row_target=512):
    """Batch elements per tile so that NB*S ~= row_target (amortize per-step overhead)."""
    cap = max(1, row_target // S)
    nb = 1
    for d in range(1, N + 1):
        if N % d == 0 and d <= cap:
            nb = d
    return nb


def modality_alignment(rgb_feat, thermal_feat, weight, bias, *,
                       s_max=512, row_target=512):
    """rgb_feat, thermal_feat: (N, C, H, W) NCHW. weight: (2, C, 1, 1), bias: (2,).

    Returns (aligned_rgb, aligned_thermal, loss) matching ModalityAlignmentModule.
    """
    N, C, H, W = rgb_feat.shape
    assert thermal_feat.shape == rgb_feat.shape
    assert C == 2, "broadcast semantics of the PyTorch module require channels == 2"
    HW = H * W
    assert HW % 128 == 0, "H*W must be a multiple of 128 (lane width)"

    R = HW // 128
    S = _pick_tile_rows(R, s_max)               # spatial rows (of 128 lanes) per tile
    P = 8 if S % 8 == 0 else S                  # rows kept in the per-tile loss partial
    RG = R // S                                 # spatial tiles per batch block
    NB = _pick_batch_block(N, S, row_target)    # batch elements per tile
    NG = N // NB

    # Pure-view reshape (no transpose, no extra HBM pass): (N,C,H,W) -> (N,C,R,128)
    rgb4 = rgb_feat.reshape(N, C, R, 128)
    th4 = thermal_feat.reshape(N, C, R, 128)

    params = jnp.concatenate(
        [weight.reshape(-1).astype(jnp.float32), bias.reshape(-1).astype(jnp.float32)]
    )                                           # (6,) [w00, w01, w10, w11, b0, b1]

    kernel = functools.partial(_alignment_kernel, NB=NB, S=S, P=P)

    feat_spec = pl.BlockSpec((NB, C, S, 128), lambda n, r: (n, 0, r, 0))

    arg4, ath4, psum = pl.pallas_call(
        kernel,
        out_shape=(
            jax.ShapeDtypeStruct((N, C, R, 128), rgb_feat.dtype),
            jax.ShapeDtypeStruct((N, C, R, 128), thermal_feat.dtype),
            jax.ShapeDtypeStruct((NG, RG, P, 128), jnp.float32),
        ),
        grid_spec=pltpu.PrefetchScalarGridSpec(
            num_scalar_prefetch=0,
            grid=(NG, RG),
            in_specs=[
                pl.BlockSpec(memory_space=pltpu.MemorySpace.SMEM),   # conv1x1 params
                feat_spec,                                           # rgb tile
                feat_spec,                                           # thermal tile
            ],
            out_specs=[
                feat_spec,                                           # aligned rgb
                feat_spec,                                           # aligned thermal
                pl.BlockSpec((1, 1, P, 128), lambda n, r: (n, r, 0, 0)),  # loss partials
            ],
        ),
        compiler_params=pltpu.CompilerParams(
            dimension_semantics=("parallel", "parallel"),
        ),
    )(params, rgb4, th4)

    aligned_rgb = arg4.reshape(N, C, H, W)
    aligned_thermal = ath4.reshape(N, C, H, W)

    total_sq = jnp.sum(psum)                    # finish the reduction in the wrapper
    loss = total_sq * (1.5 / float(N * C * H * W))   # mean(...) * (1 + 0.5)
    return aligned_rgb, aligned_thermal, loss


def _reference(rgb_feat, thermal_feat, weight, bias):
    # pure-JAX reference mirroring the PyTorch forward
    offsets = (
        jnp.einsum("nchw,oc->nohw", rgb_feat, weight.reshape(2, -1))
        + bias.reshape(1, 2, 1, 1)
    )
    aligned_rgb = rgb_feat + offsets
    aligned_thermal = thermal_feat - offsets
    mse = jnp.mean((rgb_feat - thermal_feat) ** 2)
    loss = mse + 0.5 * mse
    return aligned_rgb, aligned_thermal, loss


if __name__ == "__main__":
    key = jax.random.PRNGKey(0)
    k_rgb, k_th, k_w, k_b = jax.random.split(key, 4)

    N, C, H, W = 2, 2, 32, 32                   # channels=2 required (see scope note)
    rgb_feat = jax.random.normal(k_rgb, (N, C, H, W), dtype=jnp.float32)
    thermal_feat = jax.random.normal(k_th, (N, C, H, W), dtype=jnp.float32)

    # deterministic conv1x1 parameters: weight (2, C, 1, 1), bias (2,)
    weight = jax.random.normal(k_w, (2, C, 1, 1), dtype=jnp.float32) * 0.1
    bias = jax.random.normal(k_b, (2,), dtype=jnp.float32) * 0.1

    aligned_rgb, aligned_thermal, loss = jax.block_until_ready(
        modality_alignment(rgb_feat, thermal_feat, weight, bias)
    )

    ref_rgb, ref_th, ref_loss = _reference(rgb_feat, thermal_feat, weight, bias)
    assert jnp.allclose(aligned_rgb, ref_rgb, atol=1e-5, rtol=1e-5)
    assert jnp.allclose(aligned_thermal, ref_th, atol=1e-5, rtol=1e-5)
    assert jnp.allclose(loss, ref_loss, atol=1e-5, rtol=1e-5)

    print("KERNEL_OK")
</pallas_src>

<mosaic_0001>
module attributes {stable_mosaic.version = 11 : i64} {
  func.func @_alignment_kernel(%arg0: i32, %arg1: i32, %arg2: memref<6xf32, #tpu.memory_space<smem>>, %arg3: memref<2x2x8x128xf32, #tpu.memory_space<vmem>>, %arg4: memref<2x2x8x128xf32, #tpu.memory_space<vmem>>, %arg5: memref<2x2x8x128xf32, #tpu.memory_space<vmem>>, %arg6: memref<2x2x8x128xf32, #tpu.memory_space<vmem>>, %arg7: memref<1x1x8x128xf32, #tpu.memory_space<vmem>>) attributes {dimension_semantics = [#tpu.dimension_semantics<parallel>, #tpu.dimension_semantics<parallel>], iteration_bounds = array<i64: 1, 1>, scalar_prefetch = 0 : i64, scratch_operands = 0 : i64, tpu.core_type = #tpu.core_type<tc>, window_params = [{transform_indices = @transform_0, window_bounds = array<i64: 6>}, {transform_indices = @transform_1, window_bounds = array<i64: 2, 2, 8, 128>}, {transform_indices = @transform_2, window_bounds = array<i64: 2, 2, 8, 128>}, {transform_indices = @transform_3, window_bounds = array<i64: 2, 2, 8, 128>}, {transform_indices = @transform_4, window_bounds = array<i64: 2, 2, 8, 128>}, {transform_indices = @transform_5, window_bounds = array<i64: 1, 1, 8, 128>}]} {
    %c0 = arith.constant 0 : index
    %0 = memref.load %arg2[%c0] : memref<6xf32, #tpu.memory_space<smem>>
    %c1 = arith.constant 1 : index
    %1 = memref.load %arg2[%c1] : memref<6xf32, #tpu.memory_space<smem>>
    %c2 = arith.constant 2 : index
    %2 = memref.load %arg2[%c2] : memref<6xf32, #tpu.memory_space<smem>>
    %c3 = arith.constant 3 : index
    %3 = memref.load %arg2[%c3] : memref<6xf32, #tpu.memory_space<smem>>
    %c4 = arith.constant 4 : index
    %4 = memref.load %arg2[%c4] : memref<6xf32, #tpu.memory_space<smem>>
    %c5 = arith.constant 5 : index
    %5 = memref.load %arg2[%c5] : memref<6xf32, #tpu.memory_space<smem>>
    %c0_0 = arith.constant 0 : index
    %c0_1 = arith.constant 0 : index
    %c0_2 = arith.constant 0 : index
    %c0_3 = arith.constant 0 : index
    %6 = vector.load %arg3[%c0_0, %c0_1, %c0_2, %c0_3] : memref<2x2x8x128xf32, #tpu.memory_space<vmem>>, vector<2x2x8x128xf32>
    %c0_4 = arith.constant 0 : index
    %c0_5 = arith.constant 0 : index
    %c0_6 = arith.constant 0 : index
    %c0_7 = arith.constant 0 : index
    %7 = vector.load %arg4[%c0_4, %c0_5, %c0_6, %c0_7] : memref<2x2x8x128xf32, #tpu.memory_space<vmem>>, vector<2x2x8x128xf32>
    %8 = vector.extract_strided_slice %6 {offsets = [0, 0, 0, 0], sizes = [2, 1, 8, 128], strides = [1, 1, 1, 1]} : vector<2x2x8x128xf32> to vector<2x1x8x128xf32>
    %9 = vector.shape_cast %8 : vector<2x1x8x128xf32> to vector<2x8x128xf32>
    %10 = vector.extract_strided_slice %6 {offsets = [0, 1, 0, 0], sizes = [2, 1, 8, 128], strides = [1, 1, 1, 1]} : vector<2x2x8x128xf32> to vector<2x1x8x128xf32>
    %11 = vector.shape_cast %10 : vector<2x1x8x128xf32> to vector<2x8x128xf32>
    %12 = vector.extract_strided_slice %7 {offsets = [0, 0, 0, 0], sizes = [2, 1, 8, 128], strides = [1, 1, 1, 1]} : vector<2x2x8x128xf32> to vector<2x1x8x128xf32>
    %13 = vector.shape_cast %12 : vector<2x1x8x128xf32> to vector<2x8x128xf32>
    %14 = vector.extract_strided_slice %7 {offsets = [0, 1, 0, 0], sizes = [2, 1, 8, 128], strides = [1, 1, 1, 1]} : vector<2x2x8x128xf32> to vector<2x1x8x128xf32>
    %15 = vector.shape_cast %14 : vector<2x1x8x128xf32> to vector<2x8x128xf32>
    %16 = vector.broadcast %0 : f32 to vector<2x8x128xf32>
    %17 = arith.mulf %16, %9 : vector<2x8x128xf32>
    %18 = vector.broadcast %1 : f32 to vector<2x8x128xf32>
    %19 = arith.mulf %18, %11 : vector<2x8x128xf32>
    %20 = arith.addf %17, %19 : vector<2x8x128xf32>
    %21 = vector.broadcast %4 : f32 to vector<2x8x128xf32>
    %22 = arith.addf %20, %21 : vector<2x8x128xf32>
    %23 = vector.broadcast %2 : f32 to vector<2x8x128xf32>
    %24 = arith.mulf %23, %9 : vector<2x8x128xf32>
    %25 = vector.broadcast %3 : f32 to vector<2x8x128xf32>
    %26 = arith.mulf %25, %11 : vector<2x8x128xf32>
    %27 = arith.addf %24, %26 : vector<2x8x128xf32>
    %28 = vector.broadcast %5 : f32 to vector<2x8x128xf32>
    %29 = arith.addf %27, %28 : vector<2x8x128xf32>
    %30 = arith.addf %9, %22 : vector<2x8x128xf32>
    %c0_8 = arith.constant 0 : index
    %c0_9 = arith.constant 0 : index
    %c0_10 = arith.constant 0 : index
    %c0_11 = arith.constant 0 : index
    %31 = vector.load %arg5[%c0_8, %c0_9, %c0_10, %c0_11] : memref<2x2x8x128xf32, #tpu.memory_space<vmem>>, vector<2x1x8x128xf32>
    %32 = vector.shape_cast %31 : vector<2x1x8x128xf32> to vector<2x8x128xf32>
    %33 = vector.shape_cast %30 : vector<2x8x128xf32> to vector<2x1x8x128xf32>
    tpu.vector_store %arg5[%c0_8, %c0_9, %c0_10, %c0_11], %33 {strides = array<i32>} : memref<2x2x8x128xf32, #tpu.memory_space<vmem>>, vector<2x1x8x128xf32>,
    %34 = arith.addf %11, %29 : vector<2x8x128xf32>
    %c0_12 = arith.constant 0 : index
    %c1_13 = arith.constant 1 : index
    %c0_14 = arith.constant 0 : index
    %c0_15 = arith.constant 0 : index
    %35 = vector.load %arg5[%c0_12, %c1_13, %c0_14, %c0_15] : memref<2x2x8x128xf32, #tpu.memory_space<vmem>>, vector<2x1x8x128xf32>
    %36 = vector.shape_cast %35 : vector<2x1x8x128xf32> to vector<2x8x128xf32>
    %37 = vector.shape_cast %34 : vector<2x8x128xf32> to vector<2x1x8x128xf32>
    tpu.vector_store %arg5[%c0_12, %c1_13, %c0_14, %c0_15], %37 {strides = array<i32>} : memref<2x2x8x128xf32, #tpu.memory_space<vmem>>, vector<2x1x8x128xf32>,
    %38 = arith.subf %13, %22 : vector<2x8x128xf32>
    %c0_16 = arith.constant 0 : index
    %c0_17 = arith.constant 0 : index
    %c0_18 = arith.constant 0 : index
    %c0_19 = arith.constant 0 : index
    %39 = vector.load %arg6[%c0_16, %c0_17, %c0_18, %c0_19] : memref<2x2x8x128xf32, #tpu.memory_space<vmem>>, vector<2x1x8x128xf32>
    %40 = vector.shape_cast %39 : vector<2x1x8x128xf32> to vector<2x8x128xf32>
    %41 = vector.shape_cast %38 : vector<2x8x128xf32> to vector<2x1x8x128xf32>
    tpu.vector_store %arg6[%c0_16, %c0_17, %c0_18, %c0_19], %41 {strides = array<i32>} : memref<2x2x8x128xf32, #tpu.memory_space<vmem>>, vector<2x1x8x128xf32>,
    %42 = arith.subf %15, %29 : vector<2x8x128xf32>
    %c0_20 = arith.constant 0 : index
    %c1_21 = arith.constant 1 : index
    %c0_22 = arith.constant 0 : index
    %c0_23 = arith.constant 0 : index
    %43 = vector.load %arg6[%c0_20, %c1_21, %c0_22, %c0_23] : memref<2x2x8x128xf32, #tpu.memory_space<vmem>>, vector<2x1x8x128xf32>
    %44 = vector.shape_cast %43 : vector<2x1x8x128xf32> to vector<2x8x128xf32>
    %45 = vector.shape_cast %42 : vector<2x8x128xf32> to vector<2x1x8x128xf32>
    tpu.vector_store %arg6[%c0_20, %c1_21, %c0_22, %c0_23], %45 {strides = array<i32>} : memref<2x2x8x128xf32, #tpu.memory_space<vmem>>, vector<2x1x8x128xf32>,
    %46 = arith.subf %9, %13 : vector<2x8x128xf32>
    %47 = arith.subf %11, %15 : vector<2x8x128xf32>
    %48 = arith.mulf %46, %46 : vector<2x8x128xf32>
    %49 = arith.mulf %47, %47 : vector<2x8x128xf32>
    %50 = arith.addf %48, %49 : vector<2x8x128xf32>
    %51 = vector.extract_strided_slice %50 {offsets = [0, 0, 0], sizes = [1, 8, 128], strides = [1, 1, 1]} : vector<2x8x128xf32> to vector<1x8x128xf32>
    %52 = vector.shape_cast %51 : vector<1x8x128xf32> to vector<8x128xf32>
    %53 = vector.extract_strided_slice %50 {offsets = [1, 0, 0], sizes = [1, 8, 128], strides = [1, 1, 1]} : vector<2x8x128xf32> to vector<1x8x128xf32>
    %54 = vector.shape_cast %53 : vector<1x8x128xf32> to vector<8x128xf32>
    %55 = arith.addf %52, %54 : vector<8x128xf32>
    %c0_24 = arith.constant 0 : index
    %c0_25 = arith.constant 0 : index
    %c0_26 = arith.constant 0 : index
    %c0_27 = arith.constant 0 : index
    %56 = vector.load %arg7[%c0_24, %c0_25, %c0_26, %c0_27] : memref<1x1x8x128xf32, #tpu.memory_space<vmem>>, vector<1x1x8x128xf32>
    %57 = vector.shape_cast %56 : vector<1x1x8x128xf32> to vector<8x128xf32>
    %58 = vector.shape_cast %55 : vector<8x128xf32> to vector<1x1x8x128xf32>
    tpu.vector_store %arg7[%c0_24, %c0_25, %c0_26, %c0_27], %58 {strides = array<i32>} : memref<1x1x8x128xf32, #tpu.memory_space<vmem>>, vector<1x1x8x128xf32>,
    return
  }
  func.func @transform_0(%arg0: i32, %arg1: i32) -> i32 {
    %c0_i32 = arith.constant 0 : i32
    %c0_i32_0 = arith.constant 0 : i32
    return %c0_i32 : i32
  }
  func.func @transform_1(%arg0: i32, %arg1: i32) -> (i32, i32, i32, i32) {
    %c0_i32 = arith.constant 0 : i32
    %c0_i32_0 = arith.constant 0 : i32
    %c0_i32_1 = arith.constant 0 : i32
    return %arg0, %c0_i32, %arg1, %c0_i32_0 : i32, i32, i32, i32
  }
  func.func @transform_2(%arg0: i32, %arg1: i32) -> (i32, i32, i32, i32) {
    %c0_i32 = arith.constant 0 : i32
    %c0_i32_0 = arith.constant 0 : i32
    %c0_i32_1 = arith.constant 0 : i32
    return %arg0, %c0_i32, %arg1, %c0_i32_0 : i32, i32, i32, i32
  }
  func.func @transform_3(%arg0: i32, %arg1: i32) -> (i32, i32, i32, i32) {
    %c0_i32 = arith.constant 0 : i32
    %c0_i32_0 = arith.constant 0 : i32
    %c0_i32_1 = arith.constant 0 : i32
    return %arg0, %c0_i32, %arg1, %c0_i32_0 : i32, i32, i32, i32
  }
  func.func @transform_4(%arg0: i32, %arg1: i32) -> (i32, i32, i32, i32) {
    %c0_i32 = arith.constant 0 : i32
    %c0_i32_0 = arith.constant 0 : i32
    %c0_i32_1 = arith.constant 0 : i32
    return %arg0, %c0_i32, %arg1, %c0_i32_0 : i32, i32, i32, i32
  }
  func.func @transform_5(%arg0: i32, %arg1: i32) -> (i32, i32, i32, i32) {
    %c0_i32 = arith.constant 0 : i32
    %c0_i32_0 = arith.constant 0 : i32
    %c0_i32_1 = arith.constant 0 : i32
    return %arg0, %arg1, %c0_i32, %c0_i32_0 : i32, i32, i32, i32
  }
}

</mosaic_0001>

<bundles_post_ra>
// kernel: tpu_custom_call.1
= control target key start
LH: loop header
LB: loop body
LE: loop exit
PB: predicated region body
PF: predicated region fallthrough
CT: control target
= control target key end

     0   :  { %11 = vsyncpa [#allocation5], 0  ;;  %s428_s0 = inlined_call_operand.hbm [shape: f32[6], index: 0, kind: input, shape index: {}]   ;;  %s429_s1 = inlined_call_operand.hbm [shape: f32[2,2,8,128], index: 1, kind: input, shape index: {}]   ;;  %s430_s2 = inlined_call_operand.hbm [shape: f32[2,2,8,128], index: 2, kind: input, shape index: {}]   ;;  %s431_s3 = inlined_call_operand.hbm [shape: f32[2,2,8,128], index: 3, kind: output, shape index: {0}]   ;;  %s432_s4 = inlined_call_operand.hbm [shape: f32[2,2,8,128], index: 4, kind: output, shape index: {1}]   ;;  %s433_s5 = inlined_call_operand.hbm [shape: f32[1,1,8,128], index: 5, kind: output, shape index: {2}]  }
   0x1   :  { %12 = vsyncpa [#allocation3], 0 }
   0x2   :  { %13 = vsyncpa [#allocation8], 0 }
   0x3   :  { %14 = vsyncpa [#allocation4], 0 }
   0x4   :  { %15 = vsyncpa [#allocation11], 0  ;;  %s21_s20 = sshll.u32 %s428_s0, 4  ;;  %s29_s23 = sshll.u32 %s429_s1, 4  ;;  %s22_s20 = int_to_ptr.hbm [resolvable:$true] %s21_s20  ;;  %s30_s23 = int_to_ptr.hbm [resolvable:$true] %s29_s23 }
   0x5   :  { %s339_s24 = smov [#allocation2]   ;;  %s340_s25 = smov [#allocation6]  }
   0x6   :  { %24 = dma.hbm_to_smem %s22_s20, 16, %s339_s24, [#allocation5]  }
   0x7   :  { %s31_s26 = sshll.u32 %s340_s25, 4  ;;  %s341_s27 = smov 128   ;;  %s32_s26 = int_to_ptr.vmem [resolvable:$true] %s31_s26 }
   0x8   :  { %s342_s28 = smov 8   ;;  %s42_s0 = sshll.u32 %s430_s2, 4  ;;  %s43_s0 = int_to_ptr.hbm [resolvable:$true] %s42_s0 }
   0x9   :  { %37 = dma.hbm_to_vmem [thread:$0]  %s30_s23, 512, %s32_s26, [#allocation3], %s341_s27, %s341_s27, %s342_s28  }
   0xa   :  { %s343_s6 = smov [#allocation7]  }
   0xb   :  { %s44_s7 = sshll.u32 %s343_s6, 4  ;;  %s45_s7 = int_to_ptr.vmem [resolvable:$true] %s44_s7 }
   0xc   :  { %50 = dma.hbm_to_vmem [thread:$0]  %s43_s0, 512, %s45_s7, [#allocation8], %s341_s27, %s341_s27, %s342_s28  }
   0xd   :  { %329 = dma.done.wait [#allocation5], 16  }
   0xe   :  { %330 = vsyncadd [#allocation5], 4294967280 }
   0xf   :  { %331 = dma.done.wait [#allocation3], 512  }
  0x10   :  { %332 = vsyncadd [#allocation3], 4294966784 }
  0x11   :  { %333 = dma.done.wait [#allocation8], 512  }
  0x12   :  { %334 = vsyncadd [#allocation8], 4294966784 }
  0x13   :  { %63 = sfence }
  0x14   :  { %s64_s1 = sld [smem:[#allocation2]]  ;;  %v70_v0 = vld [vmem:[#allocation6] sm:$0xff]  ;;  %v392_v1 = vld [vmem:[#allocation6 + $0x8] sm:$0xff]  ;;  %v72_v4 = vld [vmem:[#allocation6 + $0x10] sm:$0xff]  ;;  %s344_s12 = smov [#allocation10]  }
  0x15   :  { %v74_v2 = vld [vmem:[#allocation7] sm:$0xff]  ;;  %s184_s2 = sld [smem:[#allocation2 + $0x1]]  ;;  %v394_v5 = vld [vmem:[#allocation6 + $0x18] sm:$0xff]  ;;  %v76_v6 = vld [vmem:[#allocation7 + $0x10] sm:$0xff]  ;;  %s408_s13 = sshll.u32 %s344_s12, 4  ;;  %s148_s13 = int_to_ptr.vmem [resolvable:$true] %s408_s13 }
  0x16   :  { %v118_v3 = vsub.f32 %v70_v0, %v74_v2  ;;  %s396_s8 = sld [smem:[#allocation2 + $0x4]]  ;;  %v119_v7 = vsub.f32 %v72_v4, %v76_v6  ;;  %v75_v8 = vld [vmem:[#allocation7 + $0x8] sm:$0xff]  ;;  %v77_v9 = vld [vmem:[#allocation7 + $0x18] sm:$0xff]  ;;  %s149_s16 = sshll.u32 %s432_s4, 4  ;;  %s150_s16 = int_to_ptr.hbm [resolvable:$true] %s149_s16 }
  0x17   :  { %s185_s9 = sld [smem:[#allocation2 + $0x2]]  ;;  %v120_v10 = vsub.f32 %v392_v1, %v75_v8  ;;  %v121_v11 = vsub.f32 %v394_v5, %v77_v9  ;;  %s345_s17 = smov [#allocation12]  }
  0x18   :  { %v122_v12 = vmul.f32 %v118_v3, %v118_v3  ;;  %v123_v13 = vmul.f32 %v119_v7, %v119_v7  ;;  %s186_s10 = sld [smem:[#allocation2 + $0x3]]  ;;  %s161_s18 = sshll.u32 %s345_s17, 4  ;;  %s162_s18 = int_to_ptr.vmem [resolvable:$true] %s161_s18 }
  0x19   :  { %s400_s11 = sld [smem:[#allocation2 + $0x5]]  ;;  %v124_v14 = vmul.f32 %v120_v10, %v120_v10  ;;  %v125_v15 = vmul.f32 %v121_v11, %v121_v11  ;;  %s163_s21 = sshll.u32 %s433_s5, 4  ;;  %s164_s21 = int_to_ptr.hbm [resolvable:$true] %s163_s21 }
  0x1a   :  { %v78_v16 = vstv %s64_s1  ;;  %s346_s22 = smov [#allocation9]   ;;  %s136_s26 = sshll.u32 %s431_s3, 4  ;;  %s137_s26 = int_to_ptr.hbm [resolvable:$true] %s136_s26 }
  0x1b   :  { %v79_v17 = vmul.f32 %v78_v16, %v70_v0  ;;  %v81_v18 = vstv %s184_s2  ;;  %v80_v19 = vmul.f32 %v78_v16, %v72_v4  ;;  %v126_v22 = vadd.f32 %v124_v14, %v122_v12  ;;  %s134_s23 = sshll.u32 %s346_s22, 4  ;;  %s135_s23 = int_to_ptr.vmem [resolvable:$true] %s134_s23 }
  0x1c   :  { %v82_v20 = vmul.f32 %v81_v18, %v392_v1  ;;  %v83_v21 = vmul.f32 %v81_v18, %v394_v5  ;;  %v127_v23 = vadd.f32 %v125_v15, %v123_v13  ;;  %v86_v24 = vstv %s396_s8 }
  0x1d   :  { %v89_v25 = vstv %s185_s9 }
  0x1e   :  { %v84_v26 = vadd.f32 %v82_v20, %v79_v17  ;;  %v85_v27 = vadd.f32 %v83_v21, %v80_v19  ;;  %v90_v28 = vmul.f32 %v89_v25, %v70_v0  ;;  %v92_v29 = vstv %s186_s10 }
  0x1f   :  { %v93_v30 = vmul.f32 %v92_v29, %v392_v1  ;;  %v91_v31 = vmul.f32 %v89_v25, %v72_v4  ;;  %v94_v32 = vmul.f32 %v92_v29, %v394_v5  ;;  %v97_v35 = vstv %s400_s11 }
  0x20   :  { %v87_v33 = vadd.f32 %v86_v24, %v84_v26  ;;  %v88_v34 = vadd.f32 %v86_v24, %v85_v27  ;;  %v128_v36 = vadd.f32 %v127_v23, %v126_v22 }
  0x21   :  { %v95_v37 = vadd.f32 %v93_v30, %v90_v28  ;;  %v96_v38 = vadd.f32 %v94_v32, %v91_v31 }
  0x22   :  { %v109_v39 = vsub.f32 %v74_v2, %v87_v33  ;;  %v110_v40 = vsub.f32 %v76_v6, %v88_v34  ;;  %v100_v41 = vadd.f32 %v87_v33, %v70_v0  ;;  %129 = vst [vmem:[#allocation12] sm:$0xff] %v128_v36  ;;  %v101_v46 = vadd.f32 %v88_v34, %v72_v4 }
  0x23   :  { %v98_v42 = vadd.f32 %v97_v35, %v95_v37  ;;  %v99_v43 = vadd.f32 %v97_v35, %v96_v38 }
  0x24   :  { %111 = vst [vmem:[#allocation10] sm:$0xff] %v109_v39 }
  0x25   :  { %112 = vst [vmem:[#allocation10 + $0x10] sm:$0xff] %v110_v40  ;;  %v113_v44 = vsub.f32 %v75_v8, %v98_v42  ;;  %v114_v45 = vsub.f32 %v77_v9, %v99_v43  ;;  %v104_v47 = vadd.f32 %v98_v42, %v392_v1  ;;  %v105_v48 = vadd.f32 %v99_v43, %v394_v5 }
  0x26   :  { %102 = vst [vmem:[#allocation9] sm:$0xff] %v100_v41 }
  0x27   :  { %116 = vst [vmem:[#allocation10 + $0x8] sm:$0xff] %v113_v44 }
  0x28   :  { %117 = vst [vmem:[#allocation10 + $0x18] sm:$0xff] %v114_v45 }
  0x29   :  { %103 = vst [vmem:[#allocation9 + $0x10] sm:$0xff] %v101_v46  ;;  %155 = dma.vmem_to_hbm [thread:$0]  %s148_s13, 512, %s150_s16, [#allocation11], %s341_s27, %s341_s27, %s342_s28  }
  0x2a   :  { %107 = vst [vmem:[#allocation9 + $0x8] sm:$0xff] %v104_v47  ;;  %166 = dma.vmem_to_hbm [thread:$0]  %s162_s18, 128, %s164_s21, [#allocation11]  }
  0x2b   :  { %108 = vst [vmem:[#allocation9 + $0x18] sm:$0xff] %v105_v48 }
  0x2c   :  { %142 = dma.vmem_to_hbm [thread:$0]  %s135_s23, 512, %s137_s26, [#allocation4], %s341_s27, %s341_s27, %s342_s28  }
  0x2d   :  { %335 = dma.done.wait [#allocation4], 512  }
  0x2e   :  { %336 = vsyncadd [#allocation4], 4294966784 }
  0x2f   :  { %337 = dma.done.wait [#allocation11], 640  }
  0x30   :  { %338 = vsyncadd [#allocation11], 4294966656 }
  0x31   :  { %179 = vsyncpa [#allocation3], 1 }
  0x32   :  { %180 = vsyncpa [#allocation8], 1 }
  0x33   :  { %181 = vsyncpa [#allocation4], 1 }
  0x34   :  { %182 = vsyncpa [#allocation11], 1 }
  0x35   :  { %183 = vsyncpa [#allocation5], 1 }

</bundles_post_ra>
